<compile_context>
chip_gen: v6e
topology: v6e:2x2x1
jax: 0.10.0
libtpu: 0.0.40
codegen_flags: <defaults>
</compile_context>

<pallas_src>
import functools

import jax
import jax.numpy as jnp
from jax.experimental import pallas as pl
from jax.experimental.pallas import tpu as pltpu

NEG_SLOPE = 0.01      # nn.LeakyReLU default negative_slope
BN_EPS = 1e-5         # nn.BatchNorm2d default eps
LOGIT_PAD = 128       # lane-dense combined (classifier | domain) logits width
OUT_W = 128 + LOGIT_PAD   # single output: [di | ds | pad]=128 lanes + logits=128


def _leaky(x):
    return jnp.where(x >= 0, x, NEG_SLOPE * x)


def _round_up(n, m):
    return (n + m - 1) // m * m


# --------------------------------------------------------------------------
# Wrapper-side glue: NCHW -> padded NHWC -> im2col patches (bf16).
# Single small XLA fusion (~B*H*W*9*Cin*2 bytes at these sizes).
# --------------------------------------------------------------------------
def _im2col_bf16(x_nchw, k_pad):
    B, Cin, H, W = x_nchw.shape
    x = jnp.transpose(x_nchw, (0, 2, 3, 1))                       # NHWC
    xp = jnp.pad(x, ((0, 0), (1, 1), (1, 1), (0, 0)))
    taps = [xp[:, kh:kh + H, kw:kw + W, :] for kh in range(3) for kw in range(3)]
    patches = jnp.stack(taps, axis=3).reshape(B * H * W, 9 * Cin)
    patches = jnp.pad(patches, ((0, 0), (0, k_pad - 9 * Cin)))    # zero-pad K
    return patches.astype(jnp.bfloat16)


# --------------------------------------------------------------------------
# Fused VDD forward: one gridless pallas_call, everything resident in VMEM.
# Inputs:  patches (B*HW,K) bf16, w_bb (K,C) bf16, w_feat (C,2C) bf16,
#          wd1 (C,C) bf16, wcomb (2C,128) bf16, vecs (6,128) f32.
# Output:  (B, 256) f32 = [di(:C) | ds(C:2C) | 0 | class+domain logits (128)].
# --------------------------------------------------------------------------
def vdd_forward(x, kp, *, num_classes):
    B, Cin, H, W = x.shape
    C = kp["w_feat"].shape[0]
    HW = H * W
    K = kp["w_bb"].shape[0]
    patches = _im2col_bf16(x, K)                                  # (B*HW, K) bf16

    def kernel(p_ref, wbb_ref, wfeat_ref, wd1_ref, wcomb_ref, vec_ref, out_ref):
        vecs = vec_ref[...]                                       # (6, 128) f32
        b_bb = vecs[0:1, :C]          # backbone conv bias
        b_cv_h = vecs[1:2, :2 * C]    # [di-conv bias | classifier layer-1 bias]
        gamma = vecs[2:3, :C]         # BN affine scale
        beta = vecs[3:4, :C]          # BN affine shift
        bd1 = vecs[4:5, :C]           # domain layer-1 bias
        bcomb = vecs[5:6, :]          # combined [class | domain] output bias

        # Backbone: conv3x3(s1,p1) as one bf16 MXU matmul (f32 acc), LeakyReLU,
        # global average pool -> feat (B, C). Pool = reshape + mean (no loop).
        conv = jnp.dot(p_ref[...], wbb_ref[...],
                       preferred_element_type=jnp.float32)        # (B*HW, C)
        act = _leaky(conv + b_bb)
        feat = jnp.mean(act.reshape(B, HW, C), axis=1)            # (B, C) f32

        # Fused [di-extractor center tap | classifier layer-1] matmul on feat.
        cvh = jnp.dot(feat.astype(jnp.bfloat16), wfeat_ref[...],
                      preferred_element_type=jnp.float32) + b_cv_h  # (B, 2C)
        cv = cvh[:, :C]
        h = _leaky(cvh[:, C:])

        # BatchNorm (training-mode batch stats, biased var) + LeakyReLU -> di.
        mu = jnp.mean(cv, axis=0, keepdims=True)
        var = jnp.mean(jnp.square(cv - mu), axis=0, keepdims=True)
        di = _leaky((cv - mu) * jax.lax.rsqrt(var + BN_EPS) * gamma + beta)
        ds = feat - di                                            # GRL == identity fwd

        # Domain discriminator layer-1 on (gradient-reversed) ds.
        hd = _leaky(jnp.dot(ds.astype(jnp.bfloat16), wd1_ref[...],
                            preferred_element_type=jnp.float32) + bd1)

        # Fused output projection: [h | hd] @ wcomb -> (B, 128) logits.
        hhd = jnp.concatenate([h, hd], axis=1).astype(jnp.bfloat16)  # (B, 2C)
        logits = jnp.dot(hhd, wcomb_ref[...],
                         preferred_element_type=jnp.float32) + bcomb

        # Single lane-dense (B, 256) store: [di | ds | zero-pad | logits].
        parts = [di, ds]
        if 2 * C < 128:
            parts.append(jnp.zeros((B, 128 - 2 * C), jnp.float32))
        parts.append(logits)
        out_ref[...] = jnp.concatenate(parts, axis=1)

    vmem = pl.BlockSpec(memory_space=pltpu.MemorySpace.VMEM)
    out = pl.pallas_call(
        kernel,
        out_shape=jax.ShapeDtypeStruct((B, OUT_W), jnp.float32),
        in_specs=[vmem] * 6,
        out_specs=vmem,
        compiler_params=pltpu.CompilerParams(
            vmem_limit_bytes=32 * 1024 * 1024),
    )(patches, kp["w_bb"], kp["w_feat"], kp["wd1"], kp["wcomb"], kp["vecs"])

    di_features = out[:, :C].reshape(B, C, 1, 1)                  # match NCHW conv out
    ds_features = out[:, C:2 * C].reshape(B, C, 1, 1)
    class_output = out[:, 128:128 + num_classes]
    domain_output = out[:, 128 + num_classes:128 + num_classes + 2]
    return di_features, ds_features, class_output, domain_output


# --------------------------------------------------------------------------
# Parameters: PyTorch-layout init, then one-time preprocessing into
# kernel-ready matrices (transpose / fuse / zero-pad / bf16) OUTSIDE the jit.
# --------------------------------------------------------------------------
def init_params(key, in_ch, out_ch, num_classes):
    ks = jax.random.split(key, 12)

    def w(k, shape, scale=0.05):
        return (scale * jax.random.normal(k, shape)).astype(jnp.float32)

    return {
        # backbone conv (Cout, Cin, 3, 3)
        "w_bb": w(ks[0], (out_ch, in_ch, 3, 3)),
        "b_bb": w(ks[1], (out_ch,)),
        # di_extractor conv (Cout, Cin, 3, 3) + BN affine
        "w_di": w(ks[2], (out_ch, out_ch, 3, 3)),
        "b_di": w(ks[3], (out_ch,)),
        "gamma": jnp.ones((1, out_ch), jnp.float32),
        "beta": jnp.zeros((1, out_ch), jnp.float32),
        # classifier head (Linear -> LeakyReLU -> Linear)
        "w1": w(ks[4], (out_ch, out_ch)),
        "b1": w(ks[5], (1, out_ch)),
        "w2": w(ks[6], (out_ch, num_classes)),
        "b2": w(ks[7], (1, num_classes)),
        # domain discriminator head
        "wd1": w(ks[8], (out_ch, out_ch)),
        "bd1": w(ks[9], (1, out_ch)),
        "wd2": w(ks[10], (out_ch, 2)),
        "bd2": w(ks[11], (1, 2)),
    }


def prepare_params(p, in_ch, num_classes):
    C = p["w_bb"].shape[0]
    nc = num_classes
    assert nc + 2 <= LOGIT_PAD, "num_classes + 2 must fit the 128-lane logit slab"
    assert 2 * C <= 128, "di|ds slab assumes 2*out_channels <= 128 lanes"
    K = _round_up(9 * in_ch, 8)

    # PyTorch conv weight (Cout, Cin, kh, kw) -> (kh, kw, Cin, Cout) -> matrix,
    # zero-padded along K and cast to bf16 for the MXU (im2col tap order).
    w_mat = jnp.transpose(p["w_bb"], (2, 3, 1, 0)).reshape(9 * in_ch, C)
    w_mat = jnp.pad(w_mat, ((0, K - 9 * in_ch), (0, 0))).astype(jnp.bfloat16)

    # Fused feat-consumer weight: [di-conv center tap | classifier layer-1].
    wc = p["w_di"][:, :, 1, 1].T                                  # (Cin=C, Cout=C)
    w_feat = jnp.concatenate([wc, p["w1"]], axis=1).astype(jnp.bfloat16)  # (C, 2C)

    # Fused zero-padded output projection: rows :C -> classifier cols :nc,
    # rows C: -> domain cols nc:nc+2.
    wcomb = jnp.zeros((2 * C, LOGIT_PAD), jnp.float32)
    wcomb = wcomb.at[:C, :nc].set(p["w2"])
    wcomb = wcomb.at[C:, nc:nc + 2].set(p["wd2"])

    # Pack all tiny row-vectors into one (6, 128) f32 array.
    vecs = jnp.zeros((6, LOGIT_PAD), jnp.float32)
    vecs = vecs.at[0, :C].set(p["b_bb"])
    vecs = vecs.at[1, :C].set(p["b_di"])
    vecs = vecs.at[1, C:2 * C].set(p["b1"][0])
    vecs = vecs.at[2, :C].set(p["gamma"][0])
    vecs = vecs.at[3, :C].set(p["beta"][0])
    vecs = vecs.at[4, :C].set(p["bd1"][0])
    vecs = vecs.at[5, :nc].set(p["b2"][0])
    vecs = vecs.at[5, nc:nc + 2].set(p["bd2"][0])

    return {
        "w_bb": w_mat,                                   # (K, C)   bf16
        "w_feat": w_feat,                                # (C, 2C)  bf16
        "wd1": p["wd1"].astype(jnp.bfloat16),            # (C, C)   bf16
        "wcomb": wcomb.astype(jnp.bfloat16),             # (2C,128) bf16
        "vecs": vecs,                                    # (6, 128) f32
    }


if __name__ == "__main__":
    key = jax.random.PRNGKey(0)
    kx, kparam = jax.random.split(key)

    B, Cin, H, W = 2, 3, 16, 16
    out_channels, num_classes = 32, 10

    x = jax.random.normal(kx, (B, Cin, H, W), dtype=jnp.float32)
    raw_params = init_params(kparam, Cin, out_channels, num_classes)
    kparams = prepare_params(raw_params, Cin, num_classes)

    fwd = jax.jit(functools.partial(vdd_forward, num_classes=num_classes))
    di_features, ds_features, class_output, domain_output = fwd(x, kparams)
    jax.block_until_ready((di_features, ds_features, class_output, domain_output))

    assert di_features.shape == (B, out_channels, 1, 1)
    assert ds_features.shape == (B, out_channels, 1, 1)
    assert class_output.shape == (B, num_classes)
    assert domain_output.shape == (B, 2)
    assert bool(jnp.all(jnp.isfinite(class_output))) and bool(
        jnp.all(jnp.isfinite(domain_output)))
    print("KERNEL_OK")
</pallas_src>

<mosaic_0001>
module attributes {stable_mosaic.version = 11 : i64} {
  func.func @kernel(%arg0: memref<512x32xbf16, #tpu.memory_space<vmem>>, %arg1: memref<32x32xbf16, #tpu.memory_space<vmem>>, %arg2: memref<32x64xbf16, #tpu.memory_space<vmem>>, %arg3: memref<32x32xbf16, #tpu.memory_space<vmem>>, %arg4: memref<64x128xbf16, #tpu.memory_space<vmem>>, %arg5: memref<6x128xf32, #tpu.memory_space<vmem>>, %arg6: memref<2x256xf32, #tpu.memory_space<vmem>>) attributes {dimension_semantics = [], scalar_prefetch = 0 : i64, scratch_operands = 0 : i64, tpu.core_type = #tpu.core_type<tc>} {
    %c0 = arith.constant 0 : index
    %c0_0 = arith.constant 0 : index
    %0 = vector.load %arg5[%c0, %c0_0] : memref<6x128xf32, #tpu.memory_space<vmem>>, vector<6x128xf32>
    %1 = vector.extract_strided_slice %0 {offsets = [0, 0], sizes = [1, 32], strides = [1, 1]} : vector<6x128xf32> to vector<1x32xf32>
    %2 = vector.extract_strided_slice %0 {offsets = [1, 0], sizes = [1, 64], strides = [1, 1]} : vector<6x128xf32> to vector<1x64xf32>
    %3 = vector.extract_strided_slice %0 {offsets = [2, 0], sizes = [1, 32], strides = [1, 1]} : vector<6x128xf32> to vector<1x32xf32>
    %4 = vector.extract_strided_slice %0 {offsets = [3, 0], sizes = [1, 32], strides = [1, 1]} : vector<6x128xf32> to vector<1x32xf32>
    %5 = vector.extract_strided_slice %0 {offsets = [4, 0], sizes = [1, 32], strides = [1, 1]} : vector<6x128xf32> to vector<1x32xf32>
    %6 = vector.extract_strided_slice %0 {offsets = [5, 0], sizes = [1, 128], strides = [1, 1]} : vector<6x128xf32> to vector<1x128xf32>
    %c0_1 = arith.constant 0 : index
    %c0_2 = arith.constant 0 : index
    %7 = vector.load %arg0[%c0_1, %c0_2] : memref<512x32xbf16, #tpu.memory_space<vmem>>, vector<512x32xbf16>
    %c0_3 = arith.constant 0 : index
    %c0_4 = arith.constant 0 : index
    %8 = vector.load %arg1[%c0_3, %c0_4] : memref<32x32xbf16, #tpu.memory_space<vmem>>, vector<32x32xbf16>
    %cst = arith.constant dense<0.000000e+00> : vector<512x32xf32>
    %9 = tpu.matmul %7, %8, %cst {dimension_numbers = #tpu.dot_dimension_numbers<[1], [0], [0], [1], [0, 0, 1, 1], [], []>} : vector<512x32xbf16>, vector<32x32xbf16>, vector<512x32xf32> -> vector<512x32xf32>
    %10 = vector.broadcast %1 : vector<1x32xf32> to vector<512x32xf32>
    %11 = arith.addf %9, %10 : vector<512x32xf32>
    %cst_5 = arith.constant 0.000000e+00 : f32
    %12 = vector.broadcast %cst_5 : f32 to vector<512x32xf32>
    %13 = arith.cmpf oge, %11, %12 : vector<512x32xf32>
    %cst_6 = arith.constant 0.00999999977 : f32
    %14 = vector.broadcast %cst_6 : f32 to vector<512x32xf32>
    %15 = arith.mulf %14, %11 : vector<512x32xf32>
    %16 = arith.select %13, %11, %15 : vector<512x32xi1>, vector<512x32xf32>
    %17 = vector.shape_cast %16 : vector<512x32xf32> to vector<2x256x32xf32>
    %cst_7 = arith.constant dense<0.000000e+00> : vector<2x32xf32>
    %18 = vector.multi_reduction <add>, %17, %cst_7 [1] : vector<2x256x32xf32> to vector<2x32xf32>
    %cst_8 = arith.constant 2.560000e+02 : f32
    %19 = vector.broadcast %cst_8 : f32 to vector<2x32xf32>
    %20 = arith.divf %18, %19 : vector<2x32xf32>
    %21 = arith.truncf %20 : vector<2x32xf32> to vector<2x32xbf16>
    %c0_9 = arith.constant 0 : index
    %c0_10 = arith.constant 0 : index
    %22 = vector.load %arg2[%c0_9, %c0_10] : memref<32x64xbf16, #tpu.memory_space<vmem>>, vector<32x64xbf16>
    %cst_11 = arith.constant dense<0.000000e+00> : vector<2x64xf32>
    %23 = tpu.matmul %21, %22, %cst_11 {dimension_numbers = #tpu.dot_dimension_numbers<[1], [0], [0], [1], [0, 0, 1, 1], [], []>} : vector<2x32xbf16>, vector<32x64xbf16>, vector<2x64xf32> -> vector<2x64xf32>
    %24 = vector.broadcast %2 : vector<1x64xf32> to vector<2x64xf32>
    %25 = arith.addf %23, %24 : vector<2x64xf32>
    %26 = vector.extract_strided_slice %25 {offsets = [0, 0], sizes = [2, 32], strides = [1, 1]} : vector<2x64xf32> to vector<2x32xf32>
    %27 = vector.extract_strided_slice %25 {offsets = [0, 32], sizes = [2, 32], strides = [1, 1]} : vector<2x64xf32> to vector<2x32xf32>
    %cst_12 = arith.constant 0.000000e+00 : f32
    %28 = vector.broadcast %cst_12 : f32 to vector<2x32xf32>
    %29 = arith.cmpf oge, %27, %28 : vector<2x32xf32>
    %cst_13 = arith.constant 0.00999999977 : f32
    %30 = vector.broadcast %cst_13 : f32 to vector<2x32xf32>
    %31 = arith.mulf %30, %27 : vector<2x32xf32>
    %32 = arith.select %29, %27, %31 : vector<2x32xi1>, vector<2x32xf32>
    %cst_14 = arith.constant dense<0.000000e+00> : vector<32xf32>
    %33 = vector.multi_reduction <add>, %26, %cst_14 [0] : vector<2x32xf32> to vector<32xf32>
    %34 = vector.shape_cast %33 : vector<32xf32> to vector<1x32xf32>
    %cst_15 = arith.constant 2.000000e+00 : f32
    %35 = vector.broadcast %cst_15 : f32 to vector<1x32xf32>
    %36 = arith.divf %34, %35 : vector<1x32xf32>
    %37 = vector.broadcast %36 : vector<1x32xf32> to vector<2x32xf32>
    %38 = arith.subf %26, %37 : vector<2x32xf32>
    %39 = arith.mulf %38, %38 : vector<2x32xf32>
    %cst_16 = arith.constant dense<0.000000e+00> : vector<32xf32>
    %40 = vector.multi_reduction <add>, %39, %cst_16 [0] : vector<2x32xf32> to vector<32xf32>
    %41 = vector.shape_cast %40 : vector<32xf32> to vector<1x32xf32>
    %cst_17 = arith.constant 2.000000e+00 : f32
    %42 = vector.broadcast %cst_17 : f32 to vector<1x32xf32>
    %43 = arith.divf %41, %42 : vector<1x32xf32>
    %44 = vector.broadcast %36 : vector<1x32xf32> to vector<2x32xf32>
    %45 = arith.subf %26, %44 : vector<2x32xf32>
    %cst_18 = arith.constant 9.99999974E-6 : f32
    %46 = vector.broadcast %cst_18 : f32 to vector<1x32xf32>
    %47 = arith.addf %43, %46 : vector<1x32xf32>
    %48 = math.rsqrt %47 : vector<1x32xf32>
    %49 = vector.broadcast %48 : vector<1x32xf32> to vector<2x32xf32>
    %50 = arith.mulf %45, %49 : vector<2x32xf32>
    %51 = vector.broadcast %3 : vector<1x32xf32> to vector<2x32xf32>
    %52 = arith.mulf %50, %51 : vector<2x32xf32>
    %53 = vector.broadcast %4 : vector<1x32xf32> to vector<2x32xf32>
    %54 = arith.addf %52, %53 : vector<2x32xf32>
    %cst_19 = arith.constant 0.000000e+00 : f32
    %55 = vector.broadcast %cst_19 : f32 to vector<2x32xf32>
    %56 = arith.cmpf oge, %54, %55 : vector<2x32xf32>
    %cst_20 = arith.constant 0.00999999977 : f32
    %57 = vector.broadcast %cst_20 : f32 to vector<2x32xf32>
    %58 = arith.mulf %57, %54 : vector<2x32xf32>
    %59 = arith.select %56, %54, %58 : vector<2x32xi1>, vector<2x32xf32>
    %60 = arith.subf %20, %59 : vector<2x32xf32>
    %61 = arith.truncf %60 : vector<2x32xf32> to vector<2x32xbf16>
    %c0_21 = arith.constant 0 : index
    %c0_22 = arith.constant 0 : index
    %62 = vector.load %arg3[%c0_21, %c0_22] : memref<32x32xbf16, #tpu.memory_space<vmem>>, vector<32x32xbf16>
    %cst_23 = arith.constant dense<0.000000e+00> : vector<2x32xf32>
    %63 = tpu.matmul %61, %62, %cst_23 {dimension_numbers = #tpu.dot_dimension_numbers<[1], [0], [0], [1], [0, 0, 1, 1], [], []>} : vector<2x32xbf16>, vector<32x32xbf16>, vector<2x32xf32> -> vector<2x32xf32>
    %64 = vector.broadcast %5 : vector<1x32xf32> to vector<2x32xf32>
    %65 = arith.addf %63, %64 : vector<2x32xf32>
    %cst_24 = arith.constant 0.000000e+00 : f32
    %66 = vector.broadcast %cst_24 : f32 to vector<2x32xf32>
    %67 = arith.cmpf oge, %65, %66 : vector<2x32xf32>
    %cst_25 = arith.constant 0.00999999977 : f32
    %68 = vector.broadcast %cst_25 : f32 to vector<2x32xf32>
    %69 = arith.mulf %68, %65 : vector<2x32xf32>
    %70 = arith.select %67, %65, %69 : vector<2x32xi1>, vector<2x32xf32>
    %71 = tpu.concatenate %32, %70 in 1 : vector<2x32xf32>, vector<2x32xf32> -> vector<2x64xf32>
    %72 = arith.truncf %71 : vector<2x64xf32> to vector<2x64xbf16>
    %c0_26 = arith.constant 0 : index
    %c0_27 = arith.constant 0 : index
    %73 = vector.load %arg4[%c0_26, %c0_27] : memref<64x128xbf16, #tpu.memory_space<vmem>>, vector<64x128xbf16>
    %cst_28 = arith.constant dense<0.000000e+00> : vector<2x128xf32>
    %74 = tpu.matmul %72, %73, %cst_28 {dimension_numbers = #tpu.dot_dimension_numbers<[1], [0], [0], [1], [0, 0, 1, 1], [], []>} : vector<2x64xbf16>, vector<64x128xbf16>, vector<2x128xf32> -> vector<2x128xf32>
    %75 = vector.broadcast %6 : vector<1x128xf32> to vector<2x128xf32>
    %76 = arith.addf %74, %75 : vector<2x128xf32>
    %cst_29 = arith.constant 0.000000e+00 : f32
    %77 = vector.broadcast %cst_29 : f32 to vector<2x64xf32>
    %78 = tpu.concatenate %59, %60, %77, %76 in 1 : vector<2x32xf32>, vector<2x32xf32>, vector<2x64xf32>, vector<2x128xf32> -> vector<2x256xf32>
    %c0_30 = arith.constant 0 : index
    %c0_31 = arith.constant 0 : index
    %79 = vector.load %arg6[%c0_30, %c0_31] : memref<2x256xf32, #tpu.memory_space<vmem>>, vector<2x256xf32>
    tpu.vector_store %arg6[%c0_30, %c0_31], %78 {strides = array<i32>} : memref<2x256xf32, #tpu.memory_space<vmem>>, vector<2x256xf32>,
    return
  }
}

</mosaic_0001>

<bundles_post_ra>
// kernel: vdd_forward.1
= control target key start
LH: loop header
LB: loop body
LE: loop exit
PB: predicated region body
PF: predicated region fallthrough
CT: control target
= control target key end

     0   :  { %vm269_vm0 = vcmask 261120   ;;  %v93_v34 = vlaneseq  ;;  %v1567_v40 = vmov 0.0   ;;  %s2006_s1 = inlined_call_operand.vmem [shape: bf16[32,32], index: 1, kind: input, shape index: {}]   ;;  %s2007_s0 = inlined_call_operand.vmem [shape: bf16[512,32], index: 0, kind: input, shape index: {}]   ;;  %s2008_s5 = inlined_call_operand.vmem [shape: f32[6,128], index: 5, kind: input, shape index: {}]   ;;  %s2009_s2 = inlined_call_operand.vmem [shape: bf16[32,64], index: 2, kind: input, shape index: {}]   ;;  %s2010_s3 = inlined_call_operand.vmem [shape: bf16[32,32], index: 3, kind: input, shape index: {}]   ;;  %s2011_s4 = inlined_call_operand.vmem [shape: bf16[64,128], index: 4, kind: input, shape index: {}]   ;;  %s2012_s6 = inlined_call_operand.vmem [shape: f32[2,256], index: 6, kind: output, shape index: {}]  }
   0x1   :  { %v1522_v0 = vld [vmem:[%s2006_s1 + $0x8] sm:$0xff]   ;;  %v1523_v1 = vld [vmem:[%s2006_s1] sm:$0xff]   ;;  %v1526_v4 = vld [vmem:[%s2007_s0 + $0x10] sm:$0xff]  }
   0x2   :  { %1418 = vmatprep.subr.bf16.mxu0 %v1522_v0  ;;  %v1524_v2 = vld [vmem:[%s2007_s0] sm:$0xff]   ;;  %1514 = vmatprep.subr.bf16.mxu1 %v1522_v0  ;;  %v1525_v3 = vld [vmem:[%s2007_s0 + $0x8] sm:$0xff]   ;;  %v1527_v5 = vld [vmem:[%s2007_s0 + $0x18] sm:$0xff]   ;;  %v1740_v35 = vshrl.u32 %v93_v34, 7 }
   0x3   :  { %1419 = vmatpush3.bf16.msra.mxu0 %v1522_v0  ;;  %1516 = vmatpush3.bf16.msra.mxu1 %v1522_v0  ;;  %v1528_v6 = vld [vmem:[%s2007_s0 + $0x20] sm:$0xff]   ;;  %v1529_v7 = vld [vmem:[%s2007_s0 + $0x28] sm:$0xff]   ;;  %v1530_v9 = vld [vmem:[%s2007_s0 + $0x30] sm:$0xff]  }
   0x4   :  { %1420 = vmatprep.subr.bf16.mxu0 %v1523_v1  ;;  %1422 = vmatprep.mubr.msk.bf16.mxu0 %vm269_vm0, %v1524_v2  ;;  %v1543_v8 = vld [vmem:[%s2007_s0 + $0xa0] sm:$0xff]   ;;  %v1545_v10 = vld [vmem:[%s2007_s0 + $0xa8] sm:$0xff]   ;;  %v1546_v11 = vld [vmem:[%s2007_s0 + $0xb0] sm:$0xff]   ;;  %v95_v36 = vsub.s32 0, %v1740_v35 }
   0x5   :  { %1515 = vmatprep.subr.bf16.mxu1 %v1523_v1  ;;  %1462 = vmatprep.mubr.msk.bf16.mxu1 %vm269_vm0, %v1543_v8  ;;  %v1531_v12 = vld [vmem:[%s2007_s0 + $0x38] sm:$0xff]   ;;  %v1548_v14 = vld [vmem:[%s2007_s0 + $0xc0] sm:$0xff]   ;;  %v1549_v16 = vld [vmem:[%s2007_s0 + $0xc8] sm:$0xff]  }
   0x6   :  { %v1547_v13 = vld [vmem:[%s2007_s0 + $0xb8] sm:$0xff]   ;;  %v1532_v15 = vld [vmem:[%s2007_s0 + $0x40] sm:$0xff]   ;;  %v1533_v17 = vld [vmem:[%s2007_s0 + $0x48] sm:$0xff]  }
   0x7   :  { %1421 = vmatpush3.bf16.msra.mxu0 %v1523_v1  ;;  %1517 = vmatpush3.bf16.msra.mxu1 %v1523_v1  ;;  %v1550_v18 = vld [vmem:[%s2007_s0 + $0xd0] sm:$0xff]   ;;  %v1551_v20 = vld [vmem:[%s2007_s0 + $0xd8] sm:$0xff]   ;;  %v1552_v22 = vld [vmem:[%s2007_s0 + $0xe0] sm:$0xff]  }
   0x8   :  { %v1534_v19 = vld [vmem:[%s2007_s0 + $0x50] sm:$0xff]   ;;  %v1535_v21 = vld [vmem:[%s2007_s0 + $0x58] sm:$0xff]   ;;  %v1536_v23 = vld [vmem:[%s2007_s0 + $0x60] sm:$0xff]   ;;  %1486 = vmatprep.subr.bf16.mxu1 %v1567_v40 }
   0x9   :  { %v1553_v24 = vld [vmem:[%s2007_s0 + $0xe8] sm:$0xff]   ;;  %v1554_v26 = vld [vmem:[%s2007_s0 + $0xf0] sm:$0xff]   ;;  %v1555_v28 = vld [vmem:[%s2007_s0 + $0xf8] sm:$0xff]  }
   0xa   :  { %1423 = vmatmul.mubr.msk.bf16.vlgmr.msra.gmra.mxu0 %vm269_vm0, %v1525_v3  ;;  %1463 = vmatmul.mubr.msk.bf16.vlgmr.msra.gmra.mxu1 %vm269_vm0, %v1545_v10  ;;  %v1537_v25 = vld [vmem:[%s2007_s0 + $0x68] sm:$0xff]   ;;  %v1538_v27 = vld [vmem:[%s2007_s0 + $0x70] sm:$0xff]   ;;  %v1539_v29 = vld [vmem:[%s2007_s0 + $0x78] sm:$0xff]  }
   0xb   :  { %1426 = vmatprep.mubr.msk.bf16.mxu0 %vm269_vm0, %v1526_v4  ;;  %1466 = vmatprep.mubr.msk.bf16.mxu1 %vm269_vm0, %v1546_v11  ;;  %v1540_v30 = vld [vmem:[%s2007_s0 + $0x80] sm:$0xff]   ;;  %v1541_v31 = vld [vmem:[%s2007_s0 + $0x88] sm:$0xff]   ;;  %v1542_v32 = vld [vmem:[%s2007_s0 + $0x90] sm:$0xff]  }
   0xc   :  { %v1544_v33 = vld [vmem:[%s2007_s0 + $0x98] sm:$0xff]   ;;  %v1746_v37 = vld [vmem:[%s2008_s5] sm:$0x3f]  ;;  %v1556_v41 = vld [vmem:[%s2009_s2 + $0x8] sm:$0xff]  }
   0xd   :  { %v1749_v38 = vrot.slane %v1746_v37, %v95_v36  ;;  %1487 = vmatpush3.bf16.msra.mxu1 %v1556_v41 }
   0xe   :  { %1488 = vmatprep.subr.bf16.mxu1 %v1567_v40 }
  0x12   :  { %1427 = vmatmul.mubr.msk.bf16.gmra.mxu0 %vm269_vm0, %v1527_v5  ;;  %1467 = vmatmul.mubr.msk.bf16.gmra.mxu1 %vm269_vm0, %v1547_v13 }
  0x13   :  { %1430 = vmatprep.mubr.msk.bf16.mxu0 %vm269_vm0, %v1528_v6  ;;  %1470 = vmatprep.mubr.msk.bf16.mxu1 %vm269_vm0, %v1548_v14 }
  0x1a   :  { %1431 = vmatmul.mubr.msk.bf16.gmra.mxu0 %vm269_vm0, %v1529_v7  ;;  %1471 = vmatmul.mubr.msk.bf16.gmra.mxu1 %vm269_vm0, %v1549_v16 }
  0x1b   :  { %1434 = vmatprep.mubr.msk.bf16.mxu0 %vm269_vm0, %v1530_v9  ;;  %1474 = vmatprep.mubr.msk.bf16.mxu1 %vm269_vm0, %v1550_v18 }
  0x22   :  { %1435 = vmatmul.mubr.msk.bf16.gmra.mxu0 %vm269_vm0, %v1531_v12  ;;  %1475 = vmatmul.mubr.msk.bf16.gmra.mxu1 %vm269_vm0, %v1551_v20 }
  0x23   :  { %1438 = vmatprep.mubr.msk.bf16.mxu0 %vm269_vm0, %v1532_v15  ;;  %1478 = vmatprep.mubr.msk.bf16.mxu1 %vm269_vm0, %v1552_v22 }
  0x2a   :  { %1439 = vmatmul.mubr.msk.bf16.gmra.mxu0 %vm269_vm0, %v1533_v17  ;;  %1479 = vmatmul.mubr.msk.bf16.gmra.mxu1 %vm269_vm0, %v1553_v24 }
  0x2b   :  { %1442 = vmatprep.mubr.msk.bf16.mxu0 %vm269_vm0, %v1534_v19  ;;  %1482 = vmatprep.mubr.msk.bf16.mxu1 %vm269_vm0, %v1554_v26 }
  0x32   :  { %1443 = vmatmul.mubr.msk.bf16.gmra.mxu0 %vm269_vm0, %v1535_v21  ;;  %1483 = vmatmul.mubr.msk.bf16.gmra.mxu1 %vm269_vm0, %v1555_v28 }
  0x33   :  { %1446 = vmatprep.mubr.msk.bf16.mxu0 %vm269_vm0, %v1536_v23 }
  0x3a   :  { %1447 = vmatmul.mubr.msk.bf16.gmra.mxu0 %vm269_vm0, %v1537_v25 }
  0x3b   :  { %1450 = vmatprep.mubr.msk.bf16.mxu0 %vm269_vm0, %v1538_v27 }
  0x42   :  { %1451 = vmatmul.mubr.msk.bf16.gmra.mxu0 %vm269_vm0, %v1539_v29 }
  0x43   :  { %1454 = vmatprep.mubr.msk.bf16.mxu0 %vm269_vm0, %v1540_v30 }
  0x4a   :  { %1455 = vmatmul.mubr.msk.bf16.gmra.mxu0 %vm269_vm0, %v1541_v31 }
  0x4b   :  { %1458 = vmatprep.mubr.msk.bf16.mxu0 %vm269_vm0, %v1542_v32 }
  0x52   :  { %1459 = vmatmul.mubr.msk.bf16.gmra.mxu0 %vm269_vm0, %v1544_v33 }
  0xca   :  { %v1424_v39 = vpop.f32.mrf.mxu0 }
  0xcb   :  { %v409_v43 = vadd.f32 %v1424_v39, %v1749_v38 }
  0xcc   :  { %v400_v42 = vpop.f32.mrf.mxu0 }
  0xcd   :  { %v401_v44 = vadd.f32 %v400_v42, %v1749_v38  ;;  %v721_v49 = vmul.f32 0.01, %v409_v43  ;;  %vm657_vm2 = vcmp.ge.f32.partialorder %v409_v43, 0.0 }
  0xce   :  { %v1425_v45 = vpop.f32.mrf.mxu0 }
  0xcf   :  { %v719_v46 = vmul.f32 0.01, %v401_v44  ;;  %v412_v47 = vadd.f32 %v1425_v45, %v1749_v38  ;;  %vm655_vm1 = vcmp.ge.f32.partialorder %v401_v44, 0.0  ;;  %v785_v56 = vsel %vm657_vm2, %v409_v43, %v721_v49 }
  0xd0   :  { %v403_v48 = vpop.f32.mrf.mxu0  ;;  %v850_v2 = vsel %vm269_vm0, %v785_v56, 0.0 }
  0xd1   :  { %v404_v50 = vadd.f32 %v403_v48, %v1749_v38  ;;  %v783_v52 = vsel %vm655_vm1, %v401_v44, %v719_v46  ;;  %v722_v53 = vmul.f32 0.01, %v412_v47  ;;  %vm658_vm4 = vcmp.ge.f32.partialorder %v412_v47, 0.0 }
  0xd2   :  { %v1428_v51 = vpop.f32.mrf.mxu0  ;;  %v847_v60 = vsel %vm269_vm0, %v783_v52, 0.0 }
  0xd3   :  { %vm656_vm3 = vcmp.ge.f32.partialorder %v404_v50, 0.0  ;;  %v720_v54 = vmul.f32 0.01, %v404_v50  ;;  %v425_v58 = vadd.f32 %v1428_v51, %v1749_v38  ;;  %v786_v63 = vsel %vm658_vm4, %v412_v47, %v722_v53  ;;  %v1779_v47 = vpop.f32.mrf.mxu1  ;;  %v1557_v51 = vld [vmem:[%s2009_s2] sm:$0xff]  }
  0xd4   :  { %v416_v55 = vpop.f32.mrf.mxu0  ;;  %v852_v9 = vsel %vm269_vm0, %v786_v63, 0.0  ;;  %1489 = vmatpush3.bf16.msra.mxu1 %v1557_v51 }
  0xd5   :  { %v784_v57 = vsel %vm656_vm3, %v404_v50, %v720_v54  ;;  %v417_v59 = vadd.f32 %v416_v55, %v1749_v38  ;;  %v725_v6 = vmul.f32 0.01, %v425_v58  ;;  %vm661_vm6 = vcmp.ge.f32.partialorder %v425_v58, 0.0  ;;  %1494 = vmatprep.subr.bf16.mxu1 %v1567_v40 }
  0xd6   :  { %v848_v61 = vsel %vm269_vm0, %v784_v57, 0.0  ;;  %v1429_v62 = vpop.f32.mrf.mxu0 }
  0xd7   :  { %v849_v0 = vadd.f32 %v848_v61, %v847_v60  ;;  %vm659_vm5 = vcmp.ge.f32.partialorder %v417_v59, 0.0  ;;  %v723_v1 = vmul.f32 0.01, %v417_v59  ;;  %v428_v3 = vadd.f32 %v1429_v62, %v1749_v38  ;;  %v1788_v61 = vpop.f32.mrf.mxu1 }
  0xd8   :  { %v419_v4 = vpop.f32.mrf.mxu0  ;;  %v789_v16 = vsel %vm661_vm6, %v425_v58, %v725_v6 }
  0xd9   :  { %v851_v5 = vadd.f32 %v850_v2, %v849_v0  ;;  %v787_v7 = vsel %vm659_vm5, %v417_v59, %v723_v1  ;;  %v420_v8 = vadd.f32 %v419_v4, %v1749_v38  ;;  %v726_v12 = vmul.f32 0.01, %v428_v3 }
  0xda   :  { %v1432_v10 = vpop.f32.mrf.mxu0  ;;  %v854_v14 = vsel %vm269_vm0, %v787_v7, 0.0  ;;  %vm662_vm8 = vcmp.ge.f32.partialorder %v428_v3, 0.0  ;;  %v858_v25 = vsel %vm269_vm0, %v789_v16, 0.0 }
  0xdb   :  { %v853_v11 = vadd.f32 %v852_v9, %v851_v5  ;;  %vm660_vm7 = vcmp.ge.f32.partialorder %v420_v8, 0.0  ;;  %v724_v13 = vmul.f32 0.01, %v420_v8  ;;  %v441_v20 = vadd.f32 %v1432_v10, %v1749_v38  ;;  %v1793_v9 = vpop.f32.mrf.mxu1 }
  0xdc   :  { %v432_v15 = vpop.f32.mrf.mxu0  ;;  %v790_v23 = vsel %vm662_vm8, %v428_v3, %v726_v12 }
  0xdd   :  { %v855_v17 = vadd.f32 %v854_v14, %v853_v11  ;;  %v788_v18 = vsel %vm660_vm7, %v420_v8, %v724_v13  ;;  %v433_v21 = vadd.f32 %v432_v15, %v1749_v38  ;;  %v860_v30 = vsel %vm269_vm0, %v790_v23, 0.0 }
  0xde   :  { %v856_v19 = vsel %vm269_vm0, %v788_v18, 0.0  ;;  %v1433_v22 = vpop.f32.mrf.mxu0  ;;  %v729_v31 = vmul.f32 0.01, %v441_v20  ;;  %vm665_vm10 = vcmp.ge.f32.partialorder %v441_v20, 0.0 }
  0xdf   :  { %v857_v24 = vadd.f32 %v856_v19, %v855_v17  ;;  %vm663_vm9 = vcmp.ge.f32.partialorder %v433_v21, 0.0  ;;  %v727_v26 = vmul.f32 0.01, %v433_v21  ;;  %v444_v27 = vadd.f32 %v1433_v22, %v1749_v38  ;;  %v1801_v22 = vpop.f32.mrf.mxu1 }
  0xe0   :  { %v435_v28 = vpop.f32.mrf.mxu0  ;;  %v793_v48 = vsel %vm665_vm10, %v441_v20, %v729_v31 }
  0xe1   :  { %v859_v29 = vadd.f32 %v858_v25, %v857_v24  ;;  %v791_v32 = vsel %vm663_vm9, %v433_v21, %v727_v26  ;;  %v436_v33 = vadd.f32 %v435_v28, %v1749_v38  ;;  %v730_v41 = vmul.f32 0.01, %v444_v27 }
  0xe2   :  { %v1436_v34 = vpop.f32.mrf.mxu0  ;;  %v862_v39 = vsel %vm269_vm0, %v791_v32, 0.0  ;;  %vm666_vm12 = vcmp.ge.f32.partialorder %v444_v27, 0.0  ;;  %v866_v58 = vsel %vm269_vm0, %v793_v48, 0.0 }
  0xe3   :  { %v861_v36 = vadd.f32 %v860_v30, %v859_v29  ;;  %vm664_vm11 = vcmp.ge.f32.partialorder %v436_v33, 0.0  ;;  %v728_v42 = vmul.f32 0.01, %v436_v33  ;;  %v457_v45 = vadd.f32 %v1436_v34, %v1749_v38 }
  0xe4   :  { %v448_v43 = vpop.f32.mrf.mxu0  ;;  %v794_v54 = vsel %vm666_vm12, %v444_v27, %v730_v41 }
  0xe5   :  { %v863_v44 = vadd.f32 %v862_v39, %v861_v36  ;;  %v449_v46 = vadd.f32 %v448_v43, %v1749_v38  ;;  %v792_v49 = vsel %vm664_vm11, %v436_v33, %v728_v42  ;;  %v733_v59 = vmul.f32 0.01, %v457_v45  ;;  %v1806_v36 = vpop.f32.mrf.mxu1 }
  0xe6   :  { %v1437_v50 = vpop.f32.mrf.mxu0  ;;  %v864_v52 = vsel %vm269_vm0, %v792_v49, 0.0  ;;  %vm669_vm14 = vcmp.ge.f32.partialorder %v457_v45, 0.0  ;;  %v868_v1 = vsel %vm269_vm0, %v794_v54, 0.0 }
  0xe7   :  { %vm667_vm13 = vcmp.ge.f32.partialorder %v449_v46, 0.0  ;;  %v731_v53 = vmul.f32 0.01, %v449_v46  ;;  %v865_v55 = vadd.f32 %v864_v52, %v863_v44  ;;  %v460_v56 = vadd.f32 %v1437_v50, %v1749_v38  ;;  %v1812_v52 = vpop.f32.mrf.mxu1 }
  0xe8   :  { %v451_v57 = vpop.f32.mrf.mxu0  ;;  %v797_v6 = vsel %vm669_vm14, %v457_v45, %v733_v59 }
  0xe9   :  { %v452_v60 = vadd.f32 %v451_v57, %v1749_v38  ;;  %v867_v62 = vadd.f32 %v866_v58, %v865_v55  ;;  %v795_v63 = vsel %vm667_vm13, %v449_v46, %v731_v53  ;;  %v734_v2 = vmul.f32 0.01, %v460_v56 }
  0xea   :  { %v1440_v0 = vpop.f32.mrf.mxu0  ;;  %vm670_vm1 = vcmp.ge.f32.partialorder %v460_v56, 0.0  ;;  %v870_v7 = vsel %vm269_vm0, %v795_v63, 0.0  ;;  %v874_v20 = vsel %vm269_vm0, %v797_v6, 0.0 }
  0xeb   :  { %vm668_vm15 = vcmp.ge.f32.partialorder %v452_v60, 0.0  ;;  %v732_v3 = vmul.f32 0.01, %v452_v60  ;;  %v869_v4 = vadd.f32 %v868_v1, %v867_v62  ;;  %v473_v12 = vadd.f32 %v1440_v0, %v1749_v38 }
  0xec   :  { %v464_v5 = vpop.f32.mrf.mxu0  ;;  %v798_v15 = vsel %vm670_vm1, %v460_v56, %v734_v2 }
  0xed   :  { %v796_v8 = vsel %vm668_vm15, %v452_v60, %v732_v3  ;;  %v871_v10 = vadd.f32 %v870_v7, %v869_v4  ;;  %v465_v13 = vadd.f32 %v464_v5, %v1749_v38  ;;  %v737_v24 = vmul.f32 0.01, %v473_v12  ;;  %v1819_v3 = vpop.f32.mrf.mxu1 }
  0xee   :  { %v872_v11 = vsel %vm269_vm0, %v796_v8, 0.0  ;;  %v1441_v14 = vpop.f32.mrf.mxu0  ;;  %v876_v27 = vsel %vm269_vm0, %v798_v15, 0.0  ;;  %vm673_vm3 = vcmp.ge.f32.partialorder %v473_v12, 0.0 }
  0xef   :  { %v873_v16 = vadd.f32 %v872_v11, %v871_v10  ;;  %vm671_vm2 = vcmp.ge.f32.partialorder %v465_v13, 0.0  ;;  %v735_v17 = vmul.f32 0.01, %v465_v13  ;;  %v476_v18 = vadd.f32 %v1441_v14, %v1749_v38 }
  0xf0   :  { %v467_v19 = vpop.f32.mrf.mxu0  ;;  %v801_v39 = vsel %vm673_vm3, %v473_v12, %v737_v24 }
  0xf1   :  { %v468_v21 = vadd.f32 %v467_v19, %v1749_v38  ;;  %v875_v23 = vadd.f32 %v874_v20, %v873_v16  ;;  %v799_v25 = vsel %vm671_vm2, %v465_v13, %v735_v17  ;;  %v738_v30 = vmul.f32 0.01, %v476_v18 }
  0xf2   :  { %v1444_v26 = vpop.f32.mrf.mxu0  ;;  %v878_v32 = vsel %vm269_vm0, %v799_v25, 0.0  ;;  %vm674_vm5 = vcmp.ge.f32.partialorder %v476_v18, 0.0  ;;  %v882_v51 = vsel %vm269_vm0, %v801_v39, 0.0 }
  0xf3   :  { %vm672_vm4 = vcmp.ge.f32.partialorder %v468_v21, 0.0  ;;  %v736_v28 = vmul.f32 0.01, %v468_v21  ;;  %v877_v29 = vadd.f32 %v876_v27, %v875_v23  ;;  %v489_v43 = vadd.f32 %v1444_v26, %v1749_v38 }
  0xf4   :  { %v480_v31 = vpop.f32.mrf.mxu0  ;;  %v802_v46 = vsel %vm674_vm5, %v476_v18, %v738_v30  ;;  %v1825_v18 = vpop.f32.mrf.mxu1 }
  0xf5   :  { %v800_v33 = vsel %vm672_vm4, %v468_v21, %v736_v28  ;;  %v481_v34 = vadd.f32 %v480_v31, %v1749_v38  ;;  %v879_v41 = vadd.f32 %v878_v32, %v877_v29  ;;  %v741_v54 = vmul.f32 0.01, %v489_v43 }
  0xf6   :  { %v880_v42 = vsel %vm269_vm0, %v800_v33, 0.0  ;;  %v1445_v44 = vpop.f32.mrf.mxu0  ;;  %v884_v58 = vsel %vm269_vm0, %v802_v46, 0.0  ;;  %vm677_vm7 = vcmp.ge.f32.partialorder %v489_v43, 0.0  ;;  %v1829_v31 = vpop.f32.mrf.mxu1 }
  0xf7   :  { %vm675_vm6 = vcmp.ge.f32.partialorder %v481_v34, 0.0  ;;  %v739_v45 = vmul.f32 0.01, %v481_v34  ;;  %v881_v48 = vadd.f32 %v880_v42, %v879_v41  ;;  %v492_v49 = vadd.f32 %v1445_v44, %v1749_v38 }
  0xf8   :  { %v483_v50 = vpop.f32.mrf.mxu0  ;;  %v805_v4 = vsel %vm677_vm7, %v489_v43, %v741_v54 }
  0xf9   :  { %v883_v53 = vadd.f32 %v882_v51, %v881_v48  ;;  %v803_v55 = vsel %vm675_vm6, %v481_v34, %v739_v45  ;;  %v484_v56 = vadd.f32 %v483_v50, %v1749_v38  ;;  %v742_v60 = vmul.f32 0.01, %v492_v49  ;;  %v1837_v50 = vpop.f32.mrf.mxu1 }
  0xfa   :  { %v1448_v57 = vpop.f32.mrf.mxu0  ;;  %v886_v0 = vsel %vm269_vm0, %v803_v55, 0.0  ;;  %vm678_vm9 = vcmp.ge.f32.partialorder %v492_v49, 0.0  ;;  %v890_v15 = vsel %vm269_vm0, %v805_v4, 0.0 }
  0xfb   :  { %v885_v59 = vadd.f32 %v884_v58, %v883_v53  ;;  %vm676_vm8 = vcmp.ge.f32.partialorder %v484_v56, 0.0  ;;  %v740_v62 = vmul.f32 0.01, %v484_v56  ;;  %v505_v1 = vadd.f32 %v1448_v57, %v1749_v38 }
  0xfc   :  { %v496_v63 = vpop.f32.mrf.mxu0  ;;  %v806_v11 = vsel %vm678_vm9, %v492_v49, %v742_v60 }
  0xfd   :  { %v497_v2 = vadd.f32 %v496_v63, %v1749_v38  ;;  %v887_v5 = vadd.f32 %v886_v0, %v885_v59  ;;  %v804_v6 = vsel %vm676_vm8, %v484_v56, %v740_v62  ;;  %v745_v16 = vmul.f32 0.01, %v505_v1 }
  0xfe   :  { %v1449_v7 = vpop.f32.mrf.mxu0  ;;  %v888_v8 = vsel %vm269_vm0, %v804_v6, 0.0  ;;  %vm681_vm11 = vcmp.ge.f32.partialorder %v505_v1, 0.0  ;;  %v892_v23 = vsel %vm269_vm0, %v806_v11, 0.0 }
  0xff   :  { %vm679_vm10 = vcmp.ge.f32.partialorder %v497_v2, 0.0  ;;  %v743_v10 = vmul.f32 0.01, %v497_v2  ;;  %v889_v12 = vadd.f32 %v888_v8, %v887_v5  ;;  %v508_v13 = vadd.f32 %v1449_v7, %v1749_v38 }
 0x100   :  { %v499_v14 = vpop.f32.mrf.mxu0  ;;  %v809_v28 = vsel %vm681_vm11, %v505_v1, %v745_v16  ;;  %v1842_v1 = vpop.f32.mrf.mxu1 }
 0x101   :  { %v500_v17 = vadd.f32 %v499_v14, %v1749_v38  ;;  %v891_v19 = vadd.f32 %v890_v15, %v889_v12  ;;  %v807_v20 = vsel %vm679_vm10, %v497_v2, %v743_v10  ;;  %v746_v24 = vmul.f32 0.01, %v508_v13 }
 0x102   :  { %v1452_v21 = vpop.f32.mrf.mxu0  ;;  %vm682_vm13 = vcmp.ge.f32.partialorder %v508_v13, 0.0  ;;  %v894_v29 = vsel %vm269_vm0, %v807_v20, 0.0  ;;  %v898_v48 = vsel %vm269_vm0, %v809_v28, 0.0  ;;  %v1848_v15 = vpop.f32.mrf.mxu1 }
 0x103   :  { %vm680_vm12 = vcmp.ge.f32.partialorder %v500_v17, 0.0  ;;  %v744_v25 = vmul.f32 0.01, %v500_v17  ;;  %v893_v26 = vadd.f32 %v892_v23, %v891_v19  ;;  %v521_v34 = vadd.f32 %v1452_v21, %v1749_v38 }
 0x104   :  { %v512_v27 = vpop.f32.mrf.mxu0  ;;  %v810_v42 = vsel %vm682_vm13, %v508_v13, %v746_v24 }
 0x105   :  { %v808_v30 = vsel %vm680_vm12, %v500_v17, %v744_v25  ;;  %v895_v32 = vadd.f32 %v894_v29, %v893_v26  ;;  %v513_v39 = vadd.f32 %v512_v27, %v1749_v38  ;;  %v749_v53 = vmul.f32 0.01, %v521_v34  ;;  %v1855_v29 = vpop.f32.mrf.mxu1 }
 0x106   :  { %v896_v33 = vsel %vm269_vm0, %v808_v30, 0.0  ;;  %v1453_v41 = vpop.f32.mrf.mxu0  ;;  %v900_v56 = vsel %vm269_vm0, %v810_v42, 0.0  ;;  %vm685_vm15 = vcmp.ge.f32.partialorder %v521_v34, 0.0 }
 0x107   :  { %v897_v43 = vadd.f32 %v896_v33, %v895_v32  ;;  %vm683_vm14 = vcmp.ge.f32.partialorder %v513_v39, 0.0  ;;  %v747_v44 = vmul.f32 0.01, %v513_v39  ;;  %v524_v45 = vadd.f32 %v1453_v41, %v1749_v38 }
 0x108   :  { %v515_v46 = vpop.f32.mrf.mxu0  ;;  %v813_v2 = vsel %vm685_vm15, %v521_v34, %v749_v53 }
 0x109   :  { %v516_v49 = vadd.f32 %v515_v46, %v1749_v38  ;;  %v899_v51 = vadd.f32 %v898_v48, %v897_v43  ;;  %v811_v54 = vsel %vm683_vm14, %v513_v39, %v747_v44  ;;  %v750_v59 = vmul.f32 0.01, %v524_v45 }
 0x10a   :  { %v1456_v55 = vpop.f32.mrf.mxu0  ;;  %v902_v62 = vsel %vm269_vm0, %v811_v54, 0.0  ;;  %vm686_vm2 = vcmp.ge.f32.partialorder %v524_v45, 0.0  ;;  %v906_v14 = vsel %vm269_vm0, %v813_v2, 0.0 }
 0x10b   :  { %vm684_vm1 = vcmp.ge.f32.partialorder %v516_v49, 0.0  ;;  %v748_v57 = vmul.f32 0.01, %v516_v49  ;;  %v901_v58 = vadd.f32 %v900_v56, %v899_v51  ;;  %v537_v6 = vadd.f32 %v1456_v55, %v1749_v38  ;;  %v1863_v51 = vpop.f32.mrf.mxu1 }
 0x10c   :  { %v528_v60 = vpop.f32.mrf.mxu0  ;;  %v814_v10 = vsel %vm686_vm2, %v524_v45, %v750_v59  ;;  %v561_v56 = vadd.f32 %v1788_v61, %v1749_v38 }
 0x10d   :  { %v812_v63 = vsel %vm684_vm1, %v516_v49, %v748_v57  ;;  %v529_v0 = vadd.f32 %v528_v60, %v1749_v38  ;;  %v903_v4 = vadd.f32 %v902_v62, %v901_v58  ;;  %v753_v17 = vmul.f32 0.01, %v537_v6 }
 0x10e   :  { %v904_v5 = vsel %vm269_vm0, %v812_v63, 0.0  ;;  %v1457_v7 = vpop.f32.mrf.mxu0  ;;  %v908_v21 = vsel %vm269_vm0, %v814_v10, 0.0  ;;  %vm689_vm4 = vcmp.ge.f32.partialorder %v537_v6, 0.0  ;;  %v564_v62 = vadd.f32 %v1801_v22, %v1749_v38 }
 0x10f   :  { %v751_v8 = vmul.f32 0.01, %v529_v0  ;;  %v905_v11 = vadd.f32 %v904_v5, %v903_v4  ;;  %vm687_vm3 = vcmp.ge.f32.partialorder %v529_v0, 0.0  ;;  %v540_v12 = vadd.f32 %v1457_v7, %v1749_v38  ;;  %v1873_v4 = vpop.f32.mrf.mxu1 }
 0x110   :  { %v531_v13 = vpop.f32.mrf.mxu0  ;;  %v817_v30 = vsel %vm689_vm4, %v537_v6, %v753_v17  ;;  %v569_v63 = vadd.f32 %v1779_v47, %v1749_v38  ;;  %v759_v6 = vmul.f32 0.01, %v561_v56  ;;  %vm695_vm11 = vcmp.ge.f32.partialorder %v561_v56, 0.0 }
 0x111   :  { %v907_v16 = vadd.f32 %v906_v14, %v905_v11  ;;  %v532_v19 = vadd.f32 %v531_v13, %v1749_v38  ;;  %v815_v23 = vsel %vm687_vm3, %v529_v0, %v751_v8  ;;  %v754_v25 = vmul.f32 0.01, %v540_v12 }
 0x112   :  { %v1460_v20 = vpop.f32.mrf.mxu0  ;;  %vm690_vm6 = vcmp.ge.f32.partialorder %v540_v12, 0.0  ;;  %v916_v39 = vsel %vm269_vm0, %v815_v23, 0.0  ;;  %v919_v48 = vsel %vm269_vm0, %v817_v30, 0.0  ;;  %v572_v10 = vadd.f32 %v1793_v9, %v1749_v38 }
 0x113   :  { %v1852_v24 = vadd.f32 %v908_v21, %v907_v16  ;;  %vm688_vm5 = vcmp.ge.f32.partialorder %v532_v19, 0.0  ;;  %v752_v26 = vmul.f32 0.01, %v532_v19  ;;  %v553_v33 = vadd.f32 %v1460_v20, %v1749_v38 }
 0x114   :  { %v544_v27 = vpop.f32.mrf.mxu0  ;;  %v818_v43 = vsel %vm690_vm6, %v540_v12, %v754_v25  ;;  %v760_v11 = vmul.f32 0.01, %v564_v62  ;;  %vm696_vm12 = vcmp.ge.f32.partialorder %v564_v62, 0.0  ;;  %v1879_v12 = vpop.f32.mrf.mxu1  ;;  %v761_v13 = vmul.f32 0.01, %v569_v63 }
 0x115   :  { %v545_v28 = vadd.f32 %v544_v27, %v1749_v38  ;;  %v816_v32 = vsel %vm688_vm5, %v532_v19, %v752_v26  ;;  %v757_v54 = vmul.f32 0.01, %v553_v33  ;;  %v921_v57 = vsel %vm269_vm0, %v818_v43, 0.0 }
 0x116   :  { %v1461_v34 = vpop.f32.mrf.mxu0  ;;  %v917_v41 = vsel %vm269_vm0, %v816_v32, 0.0  ;;  %vm693_vm8 = vcmp.ge.f32.partialorder %v553_v33, 0.0  ;;  %v823_v14 = vsel %vm695_vm11, %v561_v56, %v759_v6  ;;  %v577_v17 = vadd.f32 %v1812_v52, %v1749_v38  ;;  %v1887_v26 = vpop.f32.mrf.mxu1 }
 0x117   :  { %vm691_vm7 = vcmp.ge.f32.partialorder %v545_v28, 0.0  ;;  %v755_v42 = vmul.f32 0.01, %v545_v28  ;;  %v918_v44 = vadd.f32 %v917_v41, %v916_v39  ;;  %v556_v45 = vadd.f32 %v1461_v34, %v1749_v38 }
 0x118   :  { %v547_v46 = vpop.f32.mrf.mxu0  ;;  %v821_v61 = vsel %vm693_vm8, %v553_v33, %v757_v54  ;;  %vm697_vm13 = vcmp.ge.f32.partialorder %v569_v63, 0.0  ;;  %v762_v20 = vmul.f32 0.01, %v572_v10  ;;  %v824_v21 = vsel %vm696_vm12, %v564_v62, %v760_v11 }
 0x119   :  { %v548_v49 = vadd.f32 %v547_v46, %v1749_v38  ;;  %v920_v53 = vadd.f32 %v919_v48, %v918_v44  ;;  %v819_v55 = vsel %vm691_vm7, %v545_v28, %v755_v42  ;;  %v758_v60 = vmul.f32 0.01, %v556_v45  ;;  %v624_v42 = vpop.f32.mrf.mxu1 }
 0x11a   :  { %v923_v0 = vsel %vm269_vm0, %v819_v55, 0.0  ;;  %vm694_vm10 = vcmp.ge.f32.partialorder %v556_v45, 0.0  ;;  %v927_v47 = vsel %vm269_vm0, %v821_v61, 0.0  ;;  %v580_v9 = vadd.f32 %v1825_v18, %v1749_v38 }
 0x11b   :  { %vm692_vm9 = vcmp.ge.f32.partialorder %v548_v49, 0.0  ;;  %v756_v58 = vmul.f32 0.01, %v548_v49  ;;  %v922_v59 = vadd.f32 %v921_v57, %v920_v53  ;;  %v822_v8 = vsel %vm694_vm10, %v556_v45, %v758_v60  ;;  %v1901_v55 = vpop.f32.mrf.mxu1 }
 0x11c   :  { %v929_v19 = vsel %vm269_vm0, %v822_v8, 0.0  ;;  %v931_v25 = vsel %vm269_vm0, %v823_v14, 0.0  ;;  %vm698_vm14 = vcmp.ge.f32.partialorder %v572_v10, 0.0  ;;  %v825_v27 = vsel %vm697_vm13, %v569_v63, %v761_v13 }
 0x11d   :  { %v820_v2 = vsel %vm692_vm9, %v548_v49, %v756_v58  ;;  %v924_v5 = vadd.f32 %v923_v0, %v922_v59  ;;  %v585_v30 = vadd.f32 %v1806_v36, %v1749_v38  ;;  %v763_v52 = vmul.f32 0.01, %v577_v17 }
 0x11e   :  { %v925_v7 = vsel %vm269_vm0, %v820_v2, 0.0  ;;  %v933_v32 = vsel %vm269_vm0, %v824_v21, 0.0  ;;  %vm699_vm15 = vcmp.ge.f32.partialorder %v577_v17, 0.0  ;;  %v826_v33 = vsel %vm698_vm14, %v572_v10, %v762_v20  ;;  %v627_v2 = vpop.f32.mrf.mxu1 }
 0x11f   :  { %v926_v22 = vadd.f32 %v925_v7, %v924_v5  ;;  %v588_v39 = vadd.f32 %v1819_v3, %v1749_v38  ;;  %v764_v18 = vmul.f32 0.01, %v580_v9  ;;  %v935_v41 = vsel %vm269_vm0, %v825_v27, 0.0 }
 0x120   :  { %vm700_vm1 = vcmp.ge.f32.partialorder %v580_v9, 0.0  ;;  %v765_v44 = vmul.f32 0.01, %v585_v30  ;;  %v827_v45 = vsel %vm699_vm15, %v577_v17, %v763_v52  ;;  %v593_v36 = vadd.f32 %v1837_v50, %v1749_v38 }
 0x121   :  { %v928_v16 = vadd.f32 %v927_v47, %v926_v22  ;;  %v937_v46 = vsel %vm269_vm0, %v826_v33, 0.0  ;;  %vm701_vm2 = vcmp.ge.f32.partialorder %v585_v30, 0.0  ;;  %v766_v49 = vmul.f32 0.01, %v588_v39  ;;  %v1484_v47 = vpop.f32.mrf.mxu1 }
 0x122   :  { %v828_v53 = vsel %vm700_vm1, %v580_v9, %v764_v18  ;;  %v596_v3 = vadd.f32 %v1848_v15, %v1749_v38  ;;  %v939_v54 = vsel %vm269_vm0, %v827_v45, 0.0  ;;  %vm702_vm3 = vcmp.ge.f32.partialorder %v588_v39, 0.0 }
 0x123   :  { %v930_v23 = vadd.f32 %v929_v19, %v928_v16  ;;  %v829_v56 = vsel %vm701_vm2, %v585_v30, %v765_v44  ;;  %v601_v58 = vadd.f32 %v1829_v31, %v1749_v38  ;;  %v767_v50 = vmul.f32 0.01, %v593_v36  ;;  %v640_v9 = vpop.f32.mrf.mxu1 }
 0x124   :  { %vm1568_vm4 = vmmov 0   ;;  %v941_v59 = vsel %vm269_vm0, %v828_v53, 0.0  ;;  %vm703_vm5 = vcmp.ge.f32.partialorder %v593_v36, 0.0  ;;  %v830_v60 = vsel %vm702_vm3, %v588_v39, %v766_v49 }
 0x125   :  { %v932_v28 = vadd.f32 %v931_v25, %v930_v23  ;;  %1490 = vmatprep.mubr.msk.bf16.mxu1 %vm1568_vm4, %v1567_v40  ;;  %v604_v62 = vadd.f32 %v1842_v1, %v1749_v38  ;;  %v768_v63 = vmul.f32 0.01, %v596_v3  ;;  %v943_v0 = vsel %vm269_vm0, %v829_v56, 0.0  ;;  %v1485_v39 = vpop.f32.mrf.mxu1 }
 0x126   :  { %vm704_vm6 = vcmp.ge.f32.partialorder %v596_v3, 0.0  ;;  %v769_v31 = vmul.f32 0.01, %v601_v58  ;;  %v831_v5 = vsel %vm703_vm5, %v593_v36, %v767_v50  ;;  %v609_v6 = vadd.f32 %v1863_v51, %v1749_v38 }
 0x127   :  { %v934_v34 = vadd.f32 %v933_v32, %v932_v28  ;;  %v945_v7 = vsel %vm269_vm0, %v830_v60, 0.0  ;;  %vm705_vm7 = vcmp.ge.f32.partialorder %v601_v58, 0.0  ;;  %v770_v10 = vmul.f32 0.01, %v604_v62  ;;  %v643_v53 = vpop.f32.mrf.mxu1 }
 0x128   :  { %v832_v22 = vsel %vm704_vm6, %v596_v3, %v768_v63  ;;  %v612_v1 = vadd.f32 %v1879_v12, %v1749_v38  ;;  %v947_v11 = vsel %vm269_vm0, %v831_v5, 0.0  ;;  %vm706_vm8 = vcmp.ge.f32.partialorder %v604_v62, 0.0 }
 0x129   :  { %v936_v43 = vadd.f32 %v935_v41, %v934_v34  ;;  %v833_v13 = vsel %vm705_vm7, %v601_v58, %v769_v31  ;;  %v617_v16 = vadd.f32 %v1855_v29, %v1749_v38  ;;  %v771_v17 = vmul.f32 0.01, %v609_v6 }
 0x12a   :  { %v949_v51 = vsel %vm269_vm0, %v832_v22, 0.0  ;;  %vm707_vm9 = vcmp.ge.f32.partialorder %v609_v6, 0.0  ;;  %v834_v19 = vsel %vm706_vm8, %v604_v62, %v770_v10  ;;  %v620_v21 = vadd.f32 %v1873_v4, %v1749_v38 }
 0x12b   :  { %v938_v48 = vadd.f32 %v937_v46, %v936_v43  ;;  %v772_v23 = vmul.f32 0.01, %v612_v1  ;;  %v951_v12 = vsel %vm269_vm0, %v833_v13, 0.0  ;;  %vm708_vm10 = vcmp.ge.f32.partialorder %v612_v1, 0.0 }
 0x12c   :  { %v773_v27 = vmul.f32 0.01, %v617_v16  ;;  %v835_v28 = vsel %vm707_vm9, %v609_v6, %v771_v17  ;;  %v625_v30 = vadd.f32 %v624_v42, %v1749_v38  ;;  %v953_v29 = vsel %vm269_vm0, %v834_v19, 0.0 }
 0x12d   :  { %v940_v57 = vadd.f32 %v939_v54, %v938_v48  ;;  %vm709_vm11 = vcmp.ge.f32.partialorder %v617_v16, 0.0  ;;  %v774_v32 = vmul.f32 0.01, %v620_v21  ;;  %v836_v33 = vsel %vm708_vm10, %v612_v1, %v772_v23 }
 0x12e   :  { %v628_v34 = vadd.f32 %v627_v2, %v1749_v38  ;;  %v955_v4 = vsel %vm269_vm0, %v835_v28, 0.0  ;;  %vm710_vm12 = vcmp.ge.f32.partialorder %v620_v21, 0.0  ;;  %v837_v18 = vsel %vm709_vm11, %v617_v16, %v773_v27 }
 0x12f   :  { %v942_v15 = vadd.f32 %v941_v59, %v940_v57  ;;  %v633_v43 = vadd.f32 %v1887_v26, %v1749_v38  ;;  %v775_v44 = vmul.f32 0.01, %v625_v30  ;;  %v957_v42 = vsel %vm269_vm0, %v836_v33, 0.0 }
 0x130   :  { %vm711_vm13 = vcmp.ge.f32.partialorder %v625_v30, 0.0  ;;  %v838_v45 = vsel %vm710_vm12, %v620_v21, %v774_v32  ;;  %v636_v46 = vadd.f32 %v1901_v55, %v1749_v38  ;;  %v776_v48 = vmul.f32 0.01, %v628_v34 }
 0x131   :  { %v944_v61 = vadd.f32 %v943_v0, %v942_v15  ;;  %v959_v49 = vsel %vm269_vm0, %v837_v18, 0.0  ;;  %vm712_vm14 = vcmp.ge.f32.partialorder %v628_v34, 0.0  ;;  %v777_v54 = vmul.f32 0.01, %v633_v43 }
 0x132   :  { %v839_v56 = vsel %vm711_vm13, %v625_v30, %v775_v44  ;;  %v641_v57 = vadd.f32 %v640_v9, %v1749_v38  ;;  %v961_v26 = vsel %vm269_vm0, %v838_v45, 0.0  ;;  %vm713_vm15 = vcmp.ge.f32.partialorder %v633_v43, 0.0 }
 0x133   :  { %v946_v8 = vadd.f32 %v945_v7, %v944_v61  ;;  %v778_v50 = vmul.f32 0.01, %v636_v46  ;;  %v840_v59 = vsel %vm712_vm14, %v628_v34, %v776_v48  ;;  %v644_v60 = vadd.f32 %v643_v53, %v1749_v38  ;;  %v1559_v48 = vld [vmem:[%s2010_s3] sm:$0xff]  }
 0x134   :  { %v910_v55 = vrot.slane %v1852_v24, 4  ;;  %v963_v15 = vsel %vm269_vm0, %v839_v56, 0.0  ;;  %vm714_vm1 = vcmp.ge.f32.partialorder %v636_v46, 0.0  ;;  %v841_v62 = vsel %vm713_vm15, %v633_v43, %v777_v54 }
 0x135   :  { %v948_v14 = vadd.f32 %v947_v11, %v946_v8  ;;  %v649_v0 = vadd.f32 %v1484_v47, %v1749_v38  ;;  %v779_v2 = vmul.f32 0.01, %v641_v57  ;;  %v965_v61 = vsel %vm269_vm0, %v840_v59, 0.0 }
 0x136   :  { %vm715_vm2 = vcmp.ge.f32.partialorder %v641_v57, 0.0  ;;  %v842_v31 = vsel %vm714_vm1, %v636_v46, %v778_v50  ;;  %v652_v6 = vadd.f32 %v1485_v39, %v1749_v38  ;;  %v780_v7 = vmul.f32 0.01, %v644_v60  ;;  %v1558_v46 = vld [vmem:[%s2010_s3 + $0x8] sm:$0xff]   ;;  %s1569_s3 = smov 96  }
 0x137   :  { %v950_v20 = vadd.f32 %v949_v51, %v948_v14  ;;  %v967_v8 = vsel %vm269_vm0, %v841_v62, 0.0  ;;  %vm716_vm3 = vcmp.ge.f32.partialorder %v644_v60, 0.0  ;;  %v911_v10 = vadd.f32 %v910_v55, %v1852_v24 }
 0x138   :  { %v781_v1 = vmul.f32 0.01, %v649_v0  ;;  %v843_v11 = vsel %vm715_vm2, %v641_v57, %v779_v2  ;;  %v969_v13 = vsel %vm269_vm0, %v842_v31, 0.0  ;;  %vm717_vm5 = vcmp.ge.f32.partialorder %v649_v0, 0.0 }
 0x139   :  { %v952_v25 = vadd.f32 %v951_v12, %v950_v20  ;;  %v782_v14 = vmul.f32 0.01, %v652_v6  ;;  %v844_v16 = vsel %vm716_vm3, %v644_v60, %v780_v7  ;;  %v971_v17 = vsel %vm269_vm0, %v843_v11, 0.0 }
 0x13a   :  { %vm718_vm6 = vcmp.ge.f32.partialorder %v652_v6, 0.0  ;;  %v912_v51 = vrot.slane %v911_v10, 2  ;;  %v845_v38 = vsel %vm717_vm5, %v649_v0, %v781_v1  ;;  %v973_v20 = vsel %vm269_vm0, %v844_v16, 0.0 }
 0x13b   :  { %v954_v52 = vadd.f32 %v953_v29, %v952_v25  ;;  %v846_v21 = vsel %vm718_vm6, %v652_v6, %v782_v14  ;;  %v975_v24 = vsel %vm269_vm0, %v845_v38, 0.0  ;;  %vm1002_vm7 = vcmask 1041409   ;;  %v1566_v14 = vld [vmem:[%s2008_s5] sm:$0x3f]  ;;  %s1570_s5 = smov 32  }
 0x13c   :  { %v913_v12 = vadd.f32 %v912_v51, %v911_v10  ;;  %v977_v25 = vsel %vm269_vm0, %v846_v21, 0.0  ;;  %vm1063_vm8 = vcmask 254976   ;;  %vm1226_vm11 = vcmask 523264  }
 0x13d   :  { %v956_v41 = vadd.f32 %v955_v4, %v954_v52 }
 0x13e   :  { %v914_v28 = vrot.slane %v913_v12, 1 }
 0x13f   :  { %v958_v36 = vadd.f32 %v957_v42, %v956_v41 }
 0x140   :  { %v915_v52 = vadd.f32 %v914_v28, %v913_v12 }
 0x141   :  { %v960_v3 = vadd.f32 %v959_v49, %v958_v36  ;;  %v996_v49 = vsub.s32 1, %v1740_v35 }
 0x142   :  { %v1948_v34 = vmul.f32 0.00390625, %v915_v52 }
 0x143   :  { %v962_v58 = vadd.f32 %v961_v26, %v960_v3  ;;  %v997_v53 = vrot.slane %v1746_v37, %v996_v49 }
 0x144   :  { %v988_v18 = vpack.c.bf16 %v1948_v34, %v1948_v34 }
 0x145   :  { %v964_v63 = vadd.f32 %v963_v15, %v962_v58 }
 0x146   :  { %v1000_v44 = vunpack.c.l.b16 %v988_v18  ;;  %v1562_v18 = vld [vmem:[%s2011_s4 + $0x8] sm:$0xff]  }
 0x147   :  { %v966_v5 = vadd.f32 %v965_v61, %v964_v63 }
 0x149   :  { %v968_v22 = vadd.f32 %v967_v8, %v966_v5 }
 0x14b   :  { %v970_v47 = vadd.f32 %v969_v13, %v968_v22  ;;  %v1088_v13 = vsub.s32 2, %v1740_v35 }
 0x14d   :  { %v972_v19 = vadd.f32 %v971_v17, %v970_v47  ;;  %v1093_v47 = vsub.s32 3, %v1740_v35  ;;  %v1089_v16 = vrot.slane %v1566_v14, %v1088_v13 }
 0x14f   :  { %v974_v23 = vadd.f32 %v973_v20, %v972_v19  ;;  %v1094_v38 = vrot.slane %v1566_v14, %v1093_v47 }
 0x151   :  { %v976_v9 = vadd.f32 %v975_v24, %v974_v23 }
 0x153   :  { %v978_v27 = vadd.f32 %v977_v25, %v976_v9 }
 0x155   :  { %v979_v30 = vrot.slane %v978_v27, 4 }
 0x157   :  { %v980_v29 = vadd.f32 %v979_v30, %v978_v27 }
 0x159   :  { %v981_v32 = vrot.slane %v980_v29, 2 }
 0x15b   :  { %v982_v33 = vadd.f32 %v981_v32, %v980_v29 }
 0x15d   :  { %v983_v4 = vrot.slane %v982_v33, 1 }
 0x15f   :  { %v984_v39 = vadd.f32 %v983_v4, %v982_v33 }
 0x161   :  { %v1952_v41 = vmul.f32 0.00390625, %v984_v39  ;;  %v1561_v39 = vld [vmem:[%s2011_s4 + $0x10] sm:$0xff]  }
 0x163   :  { %v989_v43 = vpack.c.bf16 %v1952_v41, %v1952_v41 }
 0x165   :  { %v1001_v42 = vunpack.c.l.b16 %v989_v43  ;;  %v1113_v43 = vsub.s32 4, %v1740_v35 }
 0x167   :  { %v1003_v45 = vsel %vm1002_vm7, %v1001_v42, %v1000_v44  ;;  %v1114_v44 = vrot.slane %v1566_v14, %v1113_v43 }
 0x168   :  { %v1004_v36 = vpack.c.b16 %v1003_v45, %v1003_v45 }
 0x16a   :  { %1491 = vmatmul.mubr.msk.bf16.vlgmr.msra.gmra.mxu1 %vm269_vm0, %v1004_v36 }
 0x16b   :  { %1498 = vmatprep.mubr.msk.bf16.mxu1 %vm1568_vm4, %v1567_v40  ;;  %1495 = vmatpush3.bf16.msra.mxu1 %v1558_v46 }
 0x16c   :  { %1496 = vmatprep.subr.bf16.mxu1 %v1567_v40 }
 0x16f   :  { %1497 = vmatpush3.bf16.msra.mxu1 %v1559_v48 }
 0x170   :  { %1502 = vmatprep.subr.bf16.mxu1 %v1567_v40 }
 0x22a   :  { %v1054_v3 = vpop.f32.mrf.mxu1 }
 0x22b   :  { %v1055_v54 = vadd.f32 %v1054_v3, %v997_v53 }
 0x22c   :  { %v1492_v56 = vpop.f32.mrf.mxu1 }
 0x22d   :  { %v1064_v57 = vsel %vm1063_vm8, %v1055_v54, 0.0  ;;  %vm1060_vm9 = vcmp.ge.f32.partialorder %v1055_v54, 0.0  ;;  %v1061_v26 = vmul.f32 0.01, %v1055_v54 }
 0x22e   :  { %v1065_v58 = vrot.slane %v1064_v57, 4  ;;  %v1057_v50 = vpop.f32.mrf.mxu1 }
 0x22f   :  { %v1062_v59 = vsel %vm1060_vm9, %v1055_v54, %v1061_v26 }
 0x230   :  { %v1066_v60 = vadd.f32 %v1065_v58, %v1064_v57  ;;  %1181 = vrot.lane.b32.xlu0 %v1062_v59, %s1569_s3  ;;  %v1493_v55 = vpop.f32.mrf.mxu1  ;;  %v1200_v57 = vsub.s32 5, %v1740_v35 }
 0x232   :  { %v1067_v15 = vrot.slane %v1066_v60, 2  ;;  %v1201_v58 = vrot.slane %v1566_v14, %v1200_v57 }
 0x234   :  { %v1068_v62 = vadd.f32 %v1067_v15, %v1066_v60 }
 0x236   :  { %v1069_v63 = vrot.slane %v1068_v62, 1 }
 0x238   :  { %v1070_v0 = vadd.f32 %v1069_v63, %v1068_v62 }
 0x23a   :  { %v1072_v37 = vmul.f32 0.5, %v1070_v0 }
 0x23c   :  { %v1073_v2 = vsub.f32 %v1055_v54, %v1072_v37 }
 0x23e   :  { %v1074_v61 = vmul.f32 %v1073_v2, %v1073_v2 }
 0x240   :  { %v1075_v31 = vsel %vm1063_vm8, %v1074_v61, 0.0 }
 0x241   :  { %v1076_v5 = vrot.slane %v1075_v31, 4 }
 0x243   :  { %v1077_v6 = vadd.f32 %v1076_v5, %v1075_v31 }
 0x245   :  { %v1078_v7 = vrot.slane %v1077_v6, 2 }
 0x247   :  { %v1079_v8 = vadd.f32 %v1078_v7, %v1077_v6 }
 0x249   :  { %v1080_v10 = vrot.slane %v1079_v8, 1 }
 0x24b   :  { %v1081_v22 = vadd.f32 %v1080_v10, %v1079_v8 }
 0x24d   :  { %v1082_v1 = vmul.f32 0.5, %v1081_v22 }
 0x24f   :  { %v1083_v11 = vadd.f32 1e-05, %v1082_v1 }
 0x251   :  { %1564 = vrsqrt.f32 %v1083_v11 }
 0x25e   :  { %v1565_v17 = vpop.eup %1564 }
 0x25f   :  { %v1085_v51 = vmul.f32 %v1565_v17, %v1073_v2 }
 0x261   :  { %v1090_v19 = vmul.f32 %v1089_v16, %v1085_v51 }
 0x263   :  { %v1095_v20 = vadd.f32 %v1094_v38, %v1090_v19 }
 0x265   :  { %vm1096_vm10 = vcmp.ge.f32.partialorder %v1095_v20, 0.0  ;;  %v1097_v21 = vmul.f32 0.01, %v1095_v20 }
 0x267   :  { %v1098_v23 = vsel %vm1096_vm10, %v1095_v20, %v1097_v21 }
 0x268   :  { %v1100_v24 = vrot.slane %v1098_v23, 1  ;;  %v1103_v12 = vsub.f32 %v1948_v34, %v1098_v23  ;;  %v1560_v34 = vld [vmem:[%s2011_s4 + $0x18] sm:$0xff]  }
 0x26a   :  { %v1104_v9 = vsub.f32 %v1952_v41, %v1100_v24  ;;  %v1105_v25 = vpack.c.bf16 %v1103_v12, %v1103_v12  ;;  %v1563_v41 = vld [vmem:[%s2011_s4] sm:$0xff]  }
 0x26c   :  { %v1272_v27 = vrot.slane %v1104_v9, 7  ;;  %v1106_v28 = vpack.c.bf16 %v1104_v9, %v1104_v9  ;;  %v1117_v52 = vunpack.c.l.b16 %v1105_v25 }
 0x26e   :  { %v1273_v30 = vsel %vm1002_vm7, %v1272_v27, %v1103_v12  ;;  %v1118_v29 = vunpack.c.l.b16 %v1106_v28 }
 0x26f   :  { %1274 = vrot.lane.b32.xlu1 %v1273_v30, %s1570_s5 }
 0x270   :  { %v1119_v32 = vrot.slane %v1118_v29, 7 }
 0x272   :  { %v1120_v33 = vsel %vm1002_vm7, %v1119_v32, %v1117_v52 }
 0x273   :  { %v1121_v4 = vpack.c.b16 %v1120_v33, %v1120_v33 }
 0x275   :  { %1499 = vmatmul.mubr.msk.bf16.vlgmr.msra.gmra.mxu1 %vm269_vm0, %v1121_v4 }
 0x276   :  { %1510 = vmatprep.mubr.msk.bf16.mxu1 %vm1568_vm4, %v1567_v40  ;;  %1503 = vmatpush3.bf16.msra.mxu1 %v1560_v34 }
 0x277   :  { %1504 = vmatprep.subr.bf16.mxu1 %v1567_v40 }
 0x27a   :  { %1505 = vmatpush3.bf16.msra.mxu1 %v1561_v39 }
 0x27b   :  { %1506 = vmatprep.subr.bf16.mxu1 %v1567_v40 }
 0x27e   :  { %1507 = vmatpush3.bf16.msra.mxu1 %v1562_v18 }
 0x27f   :  { %1508 = vmatprep.subr.bf16.mxu1 %v1567_v40 }
 0x282   :  { %1509 = vmatpush3.bf16.msra.mxu1 %v1563_v41 }
 0x2a2   :  { %v1182_v3 = vpop.permute.xlu0 %1181 }
 0x2e1   :  { %v1275_v26 = vpop.permute.xlu1 %1274 }
 0x2e2   :  { %v1277_v50 = vsel %vm269_vm0, %v1098_v23, %v1275_v26 }
 0x2e3   :  { %v1278_v55 = vsel %vm1226_vm11, %v1277_v50, 0.0 }
 0x335   :  { %v1171_v42 = vpop.f32.mrf.mxu1 }
 0x336   :  { %v1172_v45 = vadd.f32 %v1171_v42, %v1114_v44 }
 0x337   :  { %v1500_v36 = vpop.f32.mrf.mxu1 }
 0x338   :  { %v1178_v46 = vmul.f32 0.01, %v1172_v45  ;;  %vm1177_vm4 = vcmp.ge.f32.partialorder %v1172_v45, 0.0 }
 0x339   :  { %v1174_v48 = vpop.f32.mrf.mxu1 }
 0x33a   :  { %v1179_v49 = vsel %vm1177_vm4, %v1172_v45, %v1178_v46 }
 0x33b   :  { %1185 = vrot.lane.b32.xlu0 %v1179_v49, %s1570_s5  ;;  %v1501_v53 = vpop.f32.mrf.mxu1 }
 0x3ad   :  { %v1186_v54 = vpop.permute.xlu0 %1185 }
 0x3ae   :  { %v1188_v40 = vsel %vm269_vm0, %v1182_v3, %v1186_v54 }
 0x3af   :  { %v1189_v56 = vpack.c.bf16 %v1188_v40, %v1188_v40 }
 0x3b1   :  { %1511 = vmatmul.mubr.msk.bf16.vlgmr.msra.gmra.mxu1 %vm1226_vm11, %v1189_v56 }
 0x471   :  { %v1264_v59 = vpop.f32.mrf.mxu1 }
 0x472   :  { %v1265_v60 = vadd.f32 %v1264_v59, %v1201_v58 }
 0x473   :  { %v1512_v15 = vpop.f32.mrf.mxu1 }
 0x474   :  { %v1281_v62 = vcombine.low %v1278_v55, %v1265_v60 }
 0x475   :  { %v1267_v63 = vpop.f32.mrf.mxu1 }
 0x476   :  { %1372 = vst.sshfl [vmem:[%s2012_s6] sm:$0x33 pattern:$0x76325410] %v1281_v62 }
 0x477   :  { %v1513_v0 = vpop.f32.mrf.mxu1 }

</bundles_post_ra>
